<compile_context>
chip_gen: v5e
topology: v5e:2x2
jax: 0.10.0
libtpu: 0.0.40
codegen_flags: <defaults>
</compile_context>

<pallas_src>
import functools

import jax
import jax.numpy as jnp
from jax.experimental import pallas as pl
from jax.experimental.pallas import tpu as pltpu


# ----------------------------------------------------------------------------
# pltpu.roll rotation-direction probe (tiny one-time pallas_call, cached per
# backend; MUST be called eagerly once before tracing the main kernel).
# ----------------------------------------------------------------------------
_ROLL_SIGN_CACHE = {}


def _roll_sign():
    """s such that pltpu.roll(x, (s*k) % N, axis=-1)[p] == x[(p + k) % N]."""
    backend = jax.default_backend()
    if backend not in _ROLL_SIGN_CACHE:
        n = 128
        x = jnp.arange(8 * n, dtype=jnp.float32).reshape(8, n)

        def probe(x_ref, o_ref):
            o_ref[...] = pltpu.roll(x_ref[...], shift=1, axis=1)

        r = pl.pallas_call(
            probe, out_shape=jax.ShapeDtypeStruct((8, n), jnp.float32))(x)
        if bool(jnp.array_equal(r, jnp.roll(x, 1, axis=1))):
            _ROLL_SIGN_CACHE[backend] = -1   # same convention as jnp.roll
        elif bool(jnp.array_equal(r, jnp.roll(x, -1, axis=1))):
            _ROLL_SIGN_CACHE[backend] = 1    # opposite rotation direction
        else:
            raise RuntimeError("unexpected pltpu.roll semantics")
    return _ROLL_SIGN_CACHE[backend]


def _tap_masks(H, W, Bt):
    """(9, Bt*H*W) 0/1 masks selecting in-bounds source pixels per 3x3 tap,
    tiled per image so border zeros never leak across folded images."""
    yy, xx = jnp.meshgrid(jnp.arange(H), jnp.arange(W), indexing="ij")
    yy = yy.reshape(-1)
    xx = xx.reshape(-1)
    rows = []
    for ky in range(3):
        for kx in range(3):
            sy, sx = ky - 1, kx - 1
            rows.append((yy + sy >= 0) & (yy + sy < H)
                        & (xx + sx >= 0) & (xx + sx < W))
    m = jnp.stack(rows).astype(jnp.float32)          # (9, H*W)
    return jnp.tile(m, (1, Bt))                      # (9, Bt*H*W)


# ----------------------------------------------------------------------------
# Synthetic parameter initialization (raw, PyTorch-equivalent layout).
# ----------------------------------------------------------------------------
def init_conv_bn_relu(key, cin, cout):
    kw, kg, kb, km, kv = jax.random.split(key, 5)
    w = jax.random.normal(kw, (3, 3, cin, cout), jnp.float32) / jnp.sqrt(9.0 * cin)
    gamma = 1.0 + 0.1 * jax.random.normal(kg, (cout,), jnp.float32)
    beta = 0.1 * jax.random.normal(kb, (cout,), jnp.float32)
    rmean = 0.1 * jax.random.normal(km, (cout,), jnp.float32)
    rvar = 1.0 + 0.1 * jnp.abs(jax.random.normal(kv, (cout,), jnp.float32))
    scale = gamma / jnp.sqrt(rvar + 1e-5)            # eval-mode BN folded
    shift = beta - rmean * scale
    return {"w": w, "scale": scale, "shift": shift}


def init_conv3x3_act(key, cin, cout):
    kw, kb = jax.random.split(key)
    w = jax.random.normal(kw, (3, 3, cin, cout), jnp.float32) / jnp.sqrt(9.0 * cin)
    b = 0.01 * jax.random.normal(kb, (cout,), jnp.float32)
    alpha = jnp.full((cout,), 0.25, jnp.float32)     # nn.PReLU() default 0.25
    return {"w": w, "b": b, "alpha": alpha}


def init_conv1x1_prelu(key, cin, cout):
    kw, kb = jax.random.split(key)
    w = jax.random.normal(kw, (cin, cout), jnp.float32) / jnp.sqrt(float(cin))
    b = 0.01 * jax.random.normal(kb, (cout,), jnp.float32)
    return {"w": w, "b": b, "alpha": jnp.float32(0.25)}


def init_mmaf(key, planes):
    ks = jax.random.split(key, 10)
    return {
        "conv11": init_conv3x3_act(ks[0], planes, planes),
        "conv12": init_conv3x3_act(ks[1], planes, planes),
        "conv21": init_conv3x3_act(ks[2], planes, planes),
        "conv22": init_conv3x3_act(ks[3], planes, planes),
        "conv31": init_conv3x3_act(ks[4], planes, planes),
        "conv32": init_conv3x3_act(ks[5], planes, planes),
        "conv34": init_conv3x3_act(ks[6], planes * 3, planes * 3),
        "conv41": init_conv1x1_prelu(ks[7], planes * 3, planes),
        "conv42": init_conv1x1_prelu(ks[8], planes * 3, planes),
        "conv43": init_conv1x1_prelu(ks[9], planes * 3, planes),
    }


def init_mmaf_fuse(key, inc, outc):
    ks = jax.random.split(key, 16)
    names = ["conv13", "conv14", "conv15", "conv16",
             "conv13_2", "conv14_2", "conv15_2", "conv16_2",
             "conv13_3", "conv14_3", "conv15_3", "conv16_3"]
    cins = [inc, outc, outc, outc] * 3
    p = {nm: init_conv_bn_relu(ks[i], ci, outc)
         for i, (nm, ci) in enumerate(zip(names, cins))}
    for j, nm in enumerate(["mmaf3", "mmaf4", "mmaf5", "mmaf6"]):
        p[nm] = init_mmaf(ks[12 + j], outc)
    return p


# ----------------------------------------------------------------------------
# Packing: fold raw params into lane-dense (bf16) matmul weights.
# ----------------------------------------------------------------------------
def _pack_w3x3(w, scale=None):
    """(3,3,cin,cout) -> (cout, 9*cin) matmul weight (BN scale folded in)."""
    kh, kw, cin, cout = w.shape
    w2 = w.reshape(kh * kw * cin, cout).T
    if scale is not None:
        w2 = w2 * scale[:, None]
    return w2.astype(jnp.float32)


def _col(v):
    return jnp.asarray(v, jnp.float32).reshape(-1, 1)


def pack_params(raw, inc, outc):
    C = outc
    in_pad = ((inc + 7) // 8) * 8
    sfx = ["", "_2", "_3"]

    # stage-0 input conv_bn_relu trio (conv13 / conv13_2 / conv13_3).
    w0, s0 = [], []
    for j in range(3):
        cv = raw[f"conv13{sfx[j]}"]
        w = jnp.pad(cv["w"], ((0, 0), (0, 0), (0, in_pad - inc), (0, 0)))
        w0.append(_pack_w3x3(w, cv["scale"]))
        s0.append(_col(cv["shift"]))
    w_in0 = jnp.stack(w0).astype(jnp.bfloat16)        # (3, C, 9*in_pad)
    s_in0 = jnp.concatenate(s0, axis=0)               # (3C, 1)

    wf, w34s, w41s, vcols = [], [], [], []
    for k in range(4):
        idx = 3 + k
        mf = raw[f"mmaf{idx}"]
        bias_rows, alpha_rows = [], []
        for j, (ka, kb) in enumerate((("conv11", "conv12"),
                                      ("conv21", "conv22"),
                                      ("conv31", "conv32"))):
            w_sig = _pack_w3x3(mf[ka]["w"])
            w_pre = _pack_w3x3(mf[kb]["w"])
            if k < 3:   # fuse next stage's conv_bn_relu into the same matmul
                nxt = raw[f"conv1{idx + 1}{sfx[j]}"]
                w_nxt = _pack_w3x3(nxt["w"], nxt["scale"])
                s_nxt = _col(nxt["shift"])
            else:
                w_nxt = jnp.zeros((C, 9 * C), jnp.float32)
                s_nxt = jnp.zeros((C, 1), jnp.float32)
            wf.append(jnp.concatenate([w_sig, w_pre, w_nxt], axis=0))  # (3C,9C)
            bias_rows.append(jnp.concatenate(
                [_col(mf[ka]["b"]), _col(mf[kb]["b"]), s_nxt], axis=0))
            alpha_rows.append(_col(mf[kb]["alpha"]))
        w34s.append(_pack_w3x3(mf["conv34"]["w"]))                     # (3C,27C)
        w41s.append(jnp.concatenate(
            [mf[n]["w"].T for n in ("conv41", "conv42", "conv43")], axis=0))
        b41 = jnp.concatenate(
            [_col(mf[n]["b"]) for n in ("conv41", "conv42", "conv43")], axis=0)
        a41 = jnp.concatenate(
            [jnp.full((C, 1), mf[n]["alpha"], jnp.float32)
             for n in ("conv41", "conv42", "conv43")], axis=0)
        # consolidated per-channel columns, fixed layout (24C, 1):
        #   [0:9C)   pair/next biases per branch  (3 x 3C)
        #   [9C:12C) PReLU alpha of conv{j}2      (3 x C)
        #   [12C:15C) conv34 bias, [15C:18C) conv34 alpha
        #   [18C:21C) conv41/42/43 bias, [21C:24C) conv41/42/43 alpha
        vcols.append(jnp.concatenate(
            bias_rows + alpha_rows
            + [_col(mf["conv34"]["b"]), _col(mf["conv34"]["alpha"]), b41, a41],
            axis=0))

    return dict(
        w_in0=w_in0,
        s_in0=s_in0,
        w_fused=jnp.stack(wf).astype(jnp.bfloat16),    # (12, 3C, 9C)
        w34=jnp.stack(w34s).astype(jnp.bfloat16),      # (4, 3C, 27C)
        w41=jnp.stack(w41s).astype(jnp.bfloat16),      # (4, 3C, 3C)
        vcol=jnp.stack(vcols),                         # (4, 24C, 1) f32
    )


# ----------------------------------------------------------------------------
# Fused forward: one pallas_call for the whole MMAF_fuse module.
# ----------------------------------------------------------------------------
def mmaf_fuse_forward(pk, x1, x2, x3, *, batch_tile=1):
    """x1,x2,x3: NCHW float32 (B, inc, H, W).  Returns NCHW (B, 4*outc, H, W)."""
    B, inc, H, W = x1.shape
    C = pk["w_in0"].shape[1]
    in_pad = pk["w_in0"].shape[2] // 9
    HW = H * W
    Bt = batch_tile
    assert x1.shape == x2.shape == x3.shape
    assert B % Bt == 0, "batch must be divisible by batch_tile"
    assert HW % 128 == 0, "H*W must be a multiple of 128 (lane-dense layout)"
    assert C % 8 == 0 and in_pad % 8 == 0
    G = B // Bt
    N = Bt * HW
    roll_sign = _roll_sign()      # cached per backend; probed eagerly in main

    masks = _tap_masks(H, W, Bt)                                       # (9, N)
    isel = jnp.kron(jnp.eye(Bt, dtype=jnp.float32),
                    jnp.ones((1, HW), jnp.float32))                    # (Bt, N)
    csel = jnp.eye(Bt, 128, dtype=jnp.float32)                         # (Bt,128)

    def fold(x):
        x = x.reshape(B, inc, HW).astype(jnp.float32)
        if in_pad != inc:
            x = jnp.pad(x, ((0, 0), (0, in_pad - inc), (0, 0)))
        return (x.reshape(G, Bt, in_pad, HW)
                 .transpose(0, 2, 1, 3).reshape(G, in_pad, N))

    # ------------------------------------------------------------------ kernel
    def kernel(x1_ref, x2_ref, x3_ref, mask_ref, isel_ref, csel_ref,
               w_in0_ref, s_in0_ref, w_fused_ref, w34_ref, w41_ref, vcol_ref,
               out_ref, pin_ref, q_ref, p34_ref):

        def im2col_into(dst_ref, x, cin, row_stride, row_off):
            """Scatter the 9 taps of a 3x3 im2col of x:(cin,N) into dst_ref."""
            for t in range(9):
                ky, kx = t // 3, t % 3
                s = (ky - 1) * W + (kx - 1)
                if s == 0:
                    tap = x
                else:
                    tap = (pltpu.roll(x, shift=(roll_sign * s) % N, axis=1)
                           * mask_ref[t:t + 1, :])
                r0 = row_off + t * row_stride
                dst_ref[r0:r0 + cin, :] = tap

        def mm(w_bf16, rhs):
            # bf16 MXU operands, f32 accumulation.
            return jnp.dot(w_bf16, rhs.astype(jnp.bfloat16),
                           preferred_element_type=jnp.float32)

        def prelu(y, a):
            return jnp.where(y > 0, y, a * y)

        # -------- stage-0 conv_bn_relu (conv13 / conv13_2 / conv13_3) --------
        s_in0 = s_in0_ref[...]
        cs = []
        for j, xr in enumerate((x1_ref, x2_ref, x3_ref)):
            im2col_into(pin_ref, xr[...], in_pad, in_pad, 0)
            y = mm(w_in0_ref[j], pin_ref[...]) + s_in0[j * C:(j + 1) * C]
            cs.append(jnp.maximum(y, 0.0))

        # -------- 4 MMAF stages (fori_loop bounds live ranges) ---------------
        def stage(k, carry):
            vcol = vcol_ref[k]                              # (24C, 1) f32
            s34 = vcol[12 * C:15 * C]
            a34 = vcol[15 * C:18 * C]
            b41 = vcol[18 * C:21 * C]
            a41 = vcol[21 * C:24 * C]

            f_list, c_next = [], []
            for j in range(3):
                c = carry[j]
                im2col_into(q_ref, c, C, C, 0)
                # one matmul: sigmoid conv + PReLU conv + NEXT stage's
                # conv_bn_relu all share the same patch-matrix RHS.
                y = (mm(w_fused_ref[k * 3 + j], q_ref[...])
                     + vcol[3 * C * j:3 * C * (j + 1)])
                f_j = (jax.nn.sigmoid(y[:C])
                       * prelu(y[C:2 * C],
                               vcol[9 * C + C * j:9 * C + C * (j + 1)]))
                c_next.append(jnp.maximum(y[2 * C:3 * C], 0.0))
                f_list.append(f_j)
                # scatter f_j's taps straight into the conv34 patch matrix.
                im2col_into(p34_ref, f_j, C, 3 * C, j * C)
            f1, f2, f3 = f_list

            fs = prelu(mm(w34_ref[k], p34_ref[...]) + s34, a34)   # (3C, N)

            # per-image mean + unbiased std in one pass (sum / sum-of-squares)
            fe_tile = jnp.zeros((3 * C, 128), jnp.float32)
            for b in range(Bt):
                sel = isel_ref[b:b + 1, :]                        # (1, N)
                tsel = fs * sel
                s1 = jnp.sum(tsel, axis=1, keepdims=True)
                s2 = jnp.sum(tsel * tsel, axis=1, keepdims=True)
                mu = s1 * (1.0 / HW)
                var = (s2 - HW * mu * mu) * (1.0 / (HW - 1))
                fe_b = mu + jnp.sqrt(jnp.maximum(var, 0.0))       # (3C, 1)
                fe_tile = fe_tile + fe_b * csel_ref[b:b + 1, :]   # (3C, 128)

            # conv41/42/43 fused into one (3C,3C) matmul on a 128-lane tile.
            emat = prelu(mm(w41_ref[k], fe_tile) + b41, a41)      # (3C, 128)
            ef = jnp.zeros((3 * C, N), jnp.float32)
            for b in range(Bt):
                e_b = jnp.sum(emat * csel_ref[b:b + 1, :], axis=1,
                              keepdims=True)                      # (3C, 1)
                ef = ef + e_b * isel_ref[b:b + 1, :]

            m = ef[:C] * f1 + ef[C:2 * C] * f2 + ef[2 * C:] * f3
            out_ref[k] = m.astype(out_ref.dtype)
            return (c_next[0], c_next[1], c_next[2])

        _ = jax.lax.fori_loop(0, 4, stage, (cs[0], cs[1], cs[2]))

    # ------------------------------------------------------------- cost / vmem
    flops_stage0 = 3 * 2 * C * (9 * in_pad) * N
    flops_stage = (3 * 2 * (3 * C) * (9 * C) * N
                   + 2 * (3 * C) * (27 * C) * N
                   + 2 * (3 * C) * (3 * C) * 128)
    flops = G * (flops_stage0 + 4 * flops_stage)
    transc = G * 4 * (3 * C * N + 3 * C * Bt)
    param_bytes = sum(int(v.size) * v.dtype.itemsize for v in pk.values())
    io_bytes = 3 * B * in_pad * HW * 4 + B * 4 * C * HW * 4
    cost = pl.CostEstimate(flops=int(flops), transcendentals=int(transc),
                           bytes_accessed=int(param_bytes + io_bytes))

    scratch_bytes = (9 * in_pad + 36 * C) * N * 4
    blk_bytes = (3 * in_pad + 4 * C + 9 + 2 * Bt) * N * 4 + Bt * 128 * 4
    vmem_limit = int(min(48 * 2 ** 20,
                         max(32 * 2 ** 20,
                             4 * (scratch_bytes + 2 * (param_bytes + blk_bytes)))))

    in_specs = [
        pl.BlockSpec((None, in_pad, N), lambda g: (g, 0, 0)),
        pl.BlockSpec((None, in_pad, N), lambda g: (g, 0, 0)),
        pl.BlockSpec((None, in_pad, N), lambda g: (g, 0, 0)),
        pl.BlockSpec((9, N), lambda g: (0, 0)),
        pl.BlockSpec((Bt, N), lambda g: (0, 0)),
        pl.BlockSpec((Bt, 128), lambda g: (0, 0)),
        pl.BlockSpec((3, C, 9 * in_pad), lambda g: (0, 0, 0)),
        pl.BlockSpec((3 * C, 1), lambda g: (0, 0)),
        pl.BlockSpec((12, 3 * C, 9 * C), lambda g: (0, 0, 0)),
        pl.BlockSpec((4, 3 * C, 27 * C), lambda g: (0, 0, 0)),
        pl.BlockSpec((4, 3 * C, 3 * C), lambda g: (0, 0, 0)),
        pl.BlockSpec((4, 24 * C, 1), lambda g: (0, 0, 0)),
    ]

    out = pl.pallas_call(
        kernel,
        out_shape=jax.ShapeDtypeStruct((G, 4, C, N), jnp.float32),
        grid=(G,),
        in_specs=in_specs,
        out_specs=pl.BlockSpec((None, 4, C, N), lambda g: (g, 0, 0, 0)),
        scratch_shapes=[
            pltpu.VMEM((9 * in_pad, N), jnp.float32),   # input patch matrix
            pltpu.VMEM((9 * C, N), jnp.float32),        # per-branch patch
            pltpu.VMEM((27 * C, N), jnp.float32),       # conv34 patch matrix
        ],
        compiler_params=pltpu.CompilerParams(
            dimension_semantics=("parallel",),
            vmem_limit_bytes=vmem_limit),
        cost_estimate=cost,
    )(fold(x1), fold(x2), fold(x3), masks, isel, csel,
      pk["w_in0"], pk["s_in0"], pk["w_fused"], pk["w34"], pk["w41"], pk["vcol"])

    # (G, 4, C, Bt*HW) -> (B, 4C, H, W)
    out = (out.reshape(G, 4, C, Bt, HW).transpose(0, 3, 1, 2, 4)
              .reshape(B, 4 * C, H, W))
    return out


# ----------------------------------------------------------------------------
# Pure-JAX f32 reference (NCHW) for the correctness check.
# ----------------------------------------------------------------------------
def _ref_conv3x3(x, w, *, bias=None, scale=None, shift=None, act="none", alpha=None):
    w_oihw = jnp.transpose(w, (3, 2, 0, 1))
    y = jax.lax.conv_general_dilated(
        x, w_oihw, (1, 1), ((1, 1), (1, 1)),
        dimension_numbers=("NCHW", "OIHW", "NCHW"),
        precision=jax.lax.Precision.HIGHEST)
    if bias is not None:
        y = y + bias[None, :, None, None]
    if scale is not None:
        y = y * scale[None, :, None, None] + shift[None, :, None, None]
    if act == "relu":
        y = jnp.maximum(y, 0.0)
    elif act == "sigmoid":
        y = jax.nn.sigmoid(y)
    elif act == "prelu":
        y = jnp.where(y > 0, y, alpha[None, :, None, None] * y)
    return y


def _ref_mmaf(mf, x1, x2, x3):
    def fpair(x, k1, k2):
        s = _ref_conv3x3(x, mf[k1]["w"], bias=mf[k1]["b"], act="sigmoid")
        p = _ref_conv3x3(x, mf[k2]["w"], bias=mf[k2]["b"], act="prelu",
                         alpha=mf[k2]["alpha"])
        return s * p

    f1 = fpair(x1, "conv11", "conv12")
    f2 = fpair(x2, "conv21", "conv22")
    f3 = fpair(x3, "conv31", "conv32")
    fs = _ref_conv3x3(jnp.concatenate([f1, f2, f3], axis=1), mf["conv34"]["w"],
                      bias=mf["conv34"]["b"], act="prelu",
                      alpha=mf["conv34"]["alpha"])
    B, CC, H, W = fs.shape
    v = fs.reshape(B, CC, H * W)
    fe = v.mean(-1) + jnp.std(v, axis=-1, ddof=1)

    def c1x1(p):
        y = fe @ p["w"] + p["b"]
        return jnp.where(y > 0, y, p["alpha"] * y)

    E1, E2, E3 = c1x1(mf["conv41"]), c1x1(mf["conv42"]), c1x1(mf["conv43"])
    return (E1[:, :, None, None] * f1 + E2[:, :, None, None] * f2
            + E3[:, :, None, None] * f3)


def ref_mmaf_fuse(raw, x1, x2, x3):
    outs = []
    for k in range(4):
        idx = 3 + k

        def cbr(x, name):
            cv = raw[name]
            return _ref_conv3x3(x, cv["w"], scale=cv["scale"],
                                shift=cv["shift"], act="relu")

        x1 = cbr(x1, f"conv1{idx}")
        x2 = cbr(x2, f"conv1{idx}_2")
        x3 = cbr(x3, f"conv1{idx}_3")
        outs.append(_ref_mmaf(raw[f"mmaf{idx}"], x1, x2, x3))
    return jnp.concatenate(outs, axis=1)


# ----------------------------------------------------------------------------
# Main
# ----------------------------------------------------------------------------
if __name__ == "__main__":
    B, inc, outc, H, W = 4, 4, 8, 16, 16
    Bt = 2     # images folded into the lane axis; grid = B//Bt = 2 (even -> v7x)

    key = jax.random.PRNGKey(0)
    kp, k1, k2, k3 = jax.random.split(key, 4)
    raw = init_mmaf_fuse(kp, inc, outc)

    conv6 = jax.random.normal(k1, (B, inc, H, W), jnp.float32)
    conv6_2 = jax.random.normal(k2, (B, inc, H, W), jnp.float32)
    c_mix = jax.random.normal(k3, (B, inc, H, W), jnp.float32)

    _roll_sign()   # eager probe of pltpu.roll direction before tracing

    pk = pack_params(raw, inc, outc)
    run = jax.jit(functools.partial(mmaf_fuse_forward, batch_tile=Bt))
    out = run(pk, conv6, conv6_2, c_mix)
    jax.block_until_ready(out)

    assert out.shape == (B, 4 * outc, H, W), out.shape
    assert bool(jnp.all(jnp.isfinite(out)))

    ref = ref_mmaf_fuse(raw, conv6, conv6_2, c_mix)
    max_ref = float(jnp.max(jnp.abs(ref)))
    max_err = float(jnp.max(jnp.abs(out - ref)))
    # bf16 MXU operands (f32 accumulation) -> relative tolerance vs f32 ref.
    tol = 5e-2 * max(1.0, max_ref)
    assert max_err < tol, f"kernel mismatch: max|diff|={max_err} tol={tol}"
    print("KERNEL_OK")
</pallas_src>

<mosaic_0001>
module attributes {stable_mosaic.version = 11 : i64} {
  func.func @probe(%arg0: memref<8x128xf32, #tpu.memory_space<vmem>>, %arg1: memref<8x128xf32, #tpu.memory_space<vmem>>) attributes {dimension_semantics = [], scalar_prefetch = 0 : i64, scratch_operands = 0 : i64, tpu.core_type = #tpu.core_type<tc>} {
    %c0 = arith.constant 0 : index
    %c0_0 = arith.constant 0 : index
    %0 = vector.load %arg0[%c0, %c0_0] : memref<8x128xf32, #tpu.memory_space<vmem>>, vector<8x128xf32>
    %c1_i32 = arith.constant 1 : i32
    %1 = tpu.dynamic_rotate %0 by %c1_i32 dim 1 : vector<8x128xf32>, i32 -> vector<8x128xf32>
    %c0_1 = arith.constant 0 : index
    %c0_2 = arith.constant 0 : index
    %2 = vector.load %arg1[%c0_1, %c0_2] : memref<8x128xf32, #tpu.memory_space<vmem>>, vector<8x128xf32>
    tpu.vector_store %arg1[%c0_1, %c0_2], %1 {strides = array<i32>} : memref<8x128xf32, #tpu.memory_space<vmem>>, vector<8x128xf32>,
    return
  }
}

</mosaic_0001>

<bundles_post_ra>
// kernel: tpu_custom_call.1
= control target key start
LH: loop header
LB: loop body
LE: loop exit
PB: predicated region body
PF: predicated region fallthrough
CT: control target
= control target key end

     0   :  { %6 = vsyncpa [#allocation3], 0  ;;  %s118_s0 = inlined_call_operand.hbm [shape: f32[8,128], index: 0, kind: input, shape index: {}]   ;;  %s119_s1 = inlined_call_operand.hbm [shape: f32[8,128], index: 1, kind: output, shape index: {}]  }
   0x1   :  { %7 = vsyncpa [#allocation4], 0  ;;  %s13_s8 = sshll.u32 %s118_s0, 4  ;;  %s99_s9 = smov [#allocation2]   ;;  %s14_s8 = int_to_ptr.hbm [resolvable:$true] %s13_s8 }
   0x2   :  { %s15_s10 = sshll.u32 %s99_s9, 4  ;;  %s16_s10 = int_to_ptr.vmem [resolvable:$true] %s15_s10 }
   0x3   :  { %18 = dma.hbm_to_vmem [thread:$0]  %s14_s8, 128, %s16_s10, [#allocation3]  }
   0x4   :  { %95 = dma.done.wait [#allocation3], 128  }
   0x5   :  { %96 = vsyncadd [#allocation3], 4294967168  ;;  %v23_v0 = vld [vmem:[#allocation2] sm:$0xff]  ;;  %s100_s11 = smov 1   ;;  %s101_s12 = smov [#allocation5]  }
   0x6   :  { %24 = vrot.lane.b32.xlu0 %v23_v0, %s100_s11  ;;  %s32_s13 = sshll.u32 %s101_s12, 4  ;;  %s34_s16 = sshll.u32 %s119_s1, 4  ;;  %s33_s13 = int_to_ptr.vmem [resolvable:$true] %s32_s13  ;;  %s35_s16 = int_to_ptr.hbm [resolvable:$true] %s34_s16 }
  0x78   :  { %v25_v1 = vpop.permute.xlu0 %24 }
  0x79   :  { %26 = vst [vmem:[#allocation5] sm:$0xff] %v25_v1 }
  0x7a   :  { %37 = dma.vmem_to_hbm [thread:$0]  %s33_s13, 128, %s35_s16, [#allocation4]  }
  0x7b   :  { %97 = dma.done.wait [#allocation4], 128  }
  0x7c   :  { %98 = vsyncadd [#allocation4], 4294967168 }
  0x7d   :  { %42 = vsyncpa [#allocation3], 1 }
  0x7e   :  { %43 = vsyncpa [#allocation4], 1 }

</bundles_post_ra>
